<compile_context>
chip_gen: v5e
topology: v5e:2x2
jax: 0.10.0
libtpu: 0.0.40
codegen_flags: <defaults>
</compile_context>

<pallas_src>
import functools

import jax
import jax.numpy as jnp
from jax.experimental import pallas as pl
from jax.experimental.pallas import tpu as pltpu


_SQRT_2_OVER_PI = 0.7978845608028654


def _gelu_tanh(x):
    # TODO(synk): PyTorch nn.GELU() defaults to the exact erf form; erf lowering is not
    # guaranteed in Mosaic, so we use the tanh approximation (max abs err ~3e-4).
    return 0.5 * x * (1.0 + jnp.tanh(_SQRT_2_OVER_PI * (x + 0.044715 * x * x * x)))


def _sigmoid(x):
    return 1.0 / (1.0 + jnp.exp(-x))


def _mlp_gate(mean, w1, b1, w2, b2):
    # mean: (C, 1) f32 -> gate (C, 1) f32
    h = jnp.dot(w1, mean, preferred_element_type=jnp.float32) + b1    # (Cr, 1)
    h = _gelu_tanh(h)
    g = jnp.dot(w2, h, preferred_element_type=jnp.float32) + b2       # (C, 1)
    return _sigmoid(g)


# ---------------------------------------------------------------------------
# VMEM budgeting (generation-aware)
# ---------------------------------------------------------------------------
def _vmem_budget():
    """Returns (block_budget_bytes, vmem_limit_bytes) derived from the chip's VMEM."""
    cap = 64 * 1024 * 1024                     # conservative fallback (v7x-sized)
    try:
        info = pltpu.get_tpu_info()
        cap = int(getattr(info, "vmem_capacity_bytes", cap)) or cap
    except Exception:
        pass
    # block_budget: bytes available for the double-buffered activation blocks of one
    # pallas_call (weights / (C,1) accumulator / compiler scratch get the rest).
    block_budget = int(cap * 0.55)             # ~70 MiB on v5e/v6e, ~35 MiB on v7x
    vmem_limit = max(cap - (8 << 20), 32 << 20)
    return block_budget, vmem_limit


def _lane_tile(S, C, itemsize, budget, buffers):
    """Largest lane-dense S tile whose `buffers`-fold footprint fits `budget`."""
    per_lane = buffers * C * itemsize
    max_tile = budget // max(per_lane, 1)
    if S <= max_tile:
        return S                               # full-extent block (lane-dense, no tail)
    return int(max(128, (max_tile // 128) * 128))


# ---------------------------------------------------------------------------
# Kernels
# ---------------------------------------------------------------------------
def _fused_kernel(x_ref, w1_ref, b1_ref, w2_ref, b2_ref, o_ref, *, total_s):
    # Single pass over one batch slab: x_ref/o_ref are (C, S).
    xv = x_ref[...].astype(jnp.float32)
    mean = jnp.sum(xv, axis=1, keepdims=True) * (1.0 / float(total_s))     # (C, 1)
    g = _mlp_gate(mean, w1_ref[...], b1_ref[...], w2_ref[...], b2_ref[...])
    o_ref[...] = (xv * g).astype(o_ref.dtype)


def _pool_gate_kernel(x_ref, w1_ref, b1_ref, w2_ref, b2_ref, gate_ref, *,
                      total_s, s_tile):
    # x_ref   : (C, s_tile)   lane-dense activation tile for batch b
    # w1_ref  : (Cr, C), b1_ref: (Cr, 1), w2_ref: (C, Cr), b2_ref: (C, 1)
    # gate_ref: (C, 1)        resident across the S axis (accumulator, then final gate)
    s = pl.program_id(1)
    n_s = pl.num_programs(1)
    has_tail = (total_s % s_tile) != 0

    xv = x_ref[...].astype(jnp.float32)

    @pl.when(s == 0)
    def _():
        gate_ref[...] = jnp.zeros_like(gate_ref)

    if has_tail:
        # Full tiles: unmasked sum (tail mask only paid on the last tile below).
        @pl.when(s < n_s - 1)
        def _():
            gate_ref[...] += jnp.sum(xv, axis=1, keepdims=True)
    else:
        gate_ref[...] += jnp.sum(xv, axis=1, keepdims=True)

    @pl.when(s == n_s - 1)
    def _():
        if has_tail:
            col = s * s_tile + jax.lax.broadcasted_iota(jnp.int32, xv.shape, 1)
            gate_ref[...] += jnp.sum(jnp.where(col < total_s, xv, 0.0),
                                     axis=1, keepdims=True)
        mean = gate_ref[...] * (1.0 / float(total_s))                       # (C, 1)
        gate_ref[...] = _mlp_gate(mean, w1_ref[...], b1_ref[...],
                                  w2_ref[...], b2_ref[...]).astype(gate_ref.dtype)


def _scale_kernel(x_ref, gate_ref, o_ref):
    # x_ref: (C, s_tile); gate_ref: (C, 1) already in x.dtype; o_ref: (C, s_tile)
    o_ref[...] = x_ref[...] * gate_ref[...]


# ---------------------------------------------------------------------------
# Wrapper
# ---------------------------------------------------------------------------
def channel_attention_3d(x, w1, b1, w2, b2, *, force_two_pass=False, max_s_tile=None):
    """x: (B, C, D, H, W); w1: (Cr, C); b1: (Cr,); w2: (C, Cr); b2: (C,)."""
    B, C, D, H, W = x.shape
    Cr = w1.shape[0]
    assert w1.shape == (Cr, C) and w2.shape == (C, Cr)
    assert b1.shape == (Cr,) and b2.shape == (C,)

    S = D * H * W
    xr = x.reshape(B, C, S)                    # free reshape; S lands on the lane axis
    itemsize = jnp.dtype(x.dtype).itemsize

    block_budget, vmem_limit = _vmem_budget()
    weight_bytes = (Cr * C + C * Cr + Cr + C) * 4

    w1_f = w1.astype(jnp.float32)
    w2_f = w2.astype(jnp.float32)
    b1_col = b1.reshape(Cr, 1).astype(jnp.float32)
    b2_col = b2.reshape(C, 1).astype(jnp.float32)

    # ---- fused single-pass fast path: one (C, S) slab (in + out, double-buffered) fits VMEM
    fused_bytes = 4 * C * S * itemsize
    if (not force_two_pass) and fused_bytes <= block_budget:
        out = pl.pallas_call(
            functools.partial(_fused_kernel, total_s=S),
            out_shape=jax.ShapeDtypeStruct((B, C, S), x.dtype),
            grid_spec=pltpu.PrefetchScalarGridSpec(
                num_scalar_prefetch=0,
                grid=(B,),
                in_specs=[
                    pl.BlockSpec((pl.Squeezed(), C, S), lambda b: (b, 0, 0)),
                    pl.BlockSpec((Cr, C), lambda b: (0, 0)),
                    pl.BlockSpec((Cr, 1), lambda b: (0, 0)),
                    pl.BlockSpec((C, Cr), lambda b: (0, 0)),
                    pl.BlockSpec((C, 1), lambda b: (0, 0)),
                ],
                out_specs=pl.BlockSpec((pl.Squeezed(), C, S), lambda b: (b, 0, 0)),
            ),
            compiler_params=pltpu.CompilerParams(
                dimension_semantics=("parallel",),
                vmem_limit_bytes=vmem_limit),
            cost_estimate=pl.CostEstimate(
                flops=2 * B * C * S + B * 4 * C * Cr,
                transcendentals=B * (C + Cr),
                bytes_accessed=2 * B * C * S * itemsize + weight_bytes),
        )(xr, w1_f, b1_col, w2_f, b2_col)
        return out.reshape(B, C, D, H, W)

    # ---- general two-pass path ----
    # Pass 1 only double-buffers x (2 bufs); pass 2 double-buffers x and out (4 bufs).
    s_tile_pool = _lane_tile(S, C, itemsize, block_budget, buffers=2)
    s_tile_scale = _lane_tile(S, C, itemsize, block_budget, buffers=4)
    if max_s_tile is not None:                 # testing hook (keep multiple of 128)
        s_tile_pool = min(s_tile_pool, max_s_tile)
        s_tile_scale = min(s_tile_scale, max_s_tile)
    num_s_pool = pl.cdiv(S, s_tile_pool)
    num_s_scale = pl.cdiv(S, s_tile_scale)

    # ---- pass 1: global average pool + gate MLP (fused) -> (B, C, 1) float32 ----
    pool_kernel = functools.partial(_pool_gate_kernel, total_s=S, s_tile=s_tile_pool)
    gate = pl.pallas_call(
        pool_kernel,
        out_shape=jax.ShapeDtypeStruct((B, C, 1), jnp.float32),
        grid_spec=pltpu.PrefetchScalarGridSpec(
            num_scalar_prefetch=0,
            grid=(B, num_s_pool),
            in_specs=[
                pl.BlockSpec((pl.Squeezed(), C, s_tile_pool), lambda b, s: (b, 0, s)),
                pl.BlockSpec((Cr, C), lambda b, s: (0, 0)),
                pl.BlockSpec((Cr, 1), lambda b, s: (0, 0)),
                pl.BlockSpec((C, Cr), lambda b, s: (0, 0)),
                pl.BlockSpec((C, 1), lambda b, s: (0, 0)),
            ],
            out_specs=pl.BlockSpec((pl.Squeezed(), C, 1), lambda b, s: (b, 0, 0)),
        ),
        compiler_params=pltpu.CompilerParams(
            dimension_semantics=("parallel", "arbitrary"),
            vmem_limit_bytes=vmem_limit),
        cost_estimate=pl.CostEstimate(
            flops=B * C * S + B * 4 * C * Cr,
            transcendentals=B * (C + Cr),
            bytes_accessed=B * C * S * itemsize + weight_bytes + B * C * 4),
    )(xr, w1_f, b1_col, w2_f, b2_col)

    # ---- pass 2: lane-dense broadcast multiply out = x * gate (native dtype) ----
    gate_x = gate.astype(x.dtype)
    out = pl.pallas_call(
        _scale_kernel,
        out_shape=jax.ShapeDtypeStruct((B, C, S), x.dtype),
        grid_spec=pltpu.PrefetchScalarGridSpec(
            num_scalar_prefetch=0,
            grid=(B, num_s_scale),
            in_specs=[
                pl.BlockSpec((pl.Squeezed(), C, s_tile_scale), lambda b, s: (b, 0, s)),
                pl.BlockSpec((pl.Squeezed(), C, 1), lambda b, s: (b, 0, 0)),
            ],
            out_specs=pl.BlockSpec((pl.Squeezed(), C, s_tile_scale), lambda b, s: (b, 0, s)),
        ),
        compiler_params=pltpu.CompilerParams(
            dimension_semantics=("parallel", "parallel"),
            vmem_limit_bytes=vmem_limit),
        cost_estimate=pl.CostEstimate(
            flops=B * C * S,
            transcendentals=0,
            bytes_accessed=2 * B * C * S * itemsize + B * C * itemsize),
    )(xr, gate_x)

    return out.reshape(B, C, D, H, W)


def _reference_channel_attention_3d(x, w1, b1, w2, b2):
    """Pure-JAX reference (same tanh-GELU approximation as the kernel)."""
    B, C = x.shape[:2]
    mean = jnp.mean(x.reshape(B, C, -1).astype(jnp.float32), axis=-1)   # (B, C)
    h = _gelu_tanh(mean @ w1.T + b1)
    g = _sigmoid(h @ w2.T + b2)                                         # (B, C)
    return (x.astype(jnp.float32) * g[:, :, None, None, None]).astype(x.dtype)


if __name__ == "__main__":
    key = jax.random.PRNGKey(0)
    k_x, k_w1, k_b1, k_w2, k_b2, k_x2 = jax.random.split(key, 6)

    # Small shapes consistent with the module: channels=32, reduction=8 -> hidden=4
    B, C, D, H, W = 2, 32, 4, 4, 8
    reduction = 8
    Cr = C // reduction

    x = jax.random.normal(k_x, (B, C, D, H, W), dtype=jnp.float32)
    w1 = jax.random.normal(k_w1, (Cr, C), dtype=jnp.float32) * 0.3
    b1 = jax.random.normal(k_b1, (Cr,), dtype=jnp.float32) * 0.1
    w2 = jax.random.normal(k_w2, (C, Cr), dtype=jnp.float32) * 0.3
    b2 = jax.random.normal(k_b2, (C,), dtype=jnp.float32) * 0.1

    # 1) fused single-pass fast path (default for shapes that fit VMEM)
    y = jax.block_until_ready(channel_attention_3d(x, w1, b1, w2, b2))
    y_ref = _reference_channel_attention_3d(x, w1, b1, w2, b2)
    assert y.shape == (B, C, D, H, W)
    assert jnp.allclose(y, y_ref, atol=1e-5, rtol=1e-5), "fused path mismatch"

    # 2) general two-pass path, S divisible by the tile
    y2 = jax.block_until_ready(
        channel_attention_3d(x, w1, b1, w2, b2, force_two_pass=True, max_s_tile=128))
    assert jnp.allclose(y2, y_ref, atol=1e-5, rtol=1e-5), "two-pass path mismatch"

    # 3) general two-pass path with a partial tail tile (exercises the last-tile mask)
    Dt, Ht, Wt = 4, 4, 9                       # S = 144 -> tiles [128, 16]
    xt = jax.random.normal(k_x2, (B, C, Dt, Ht, Wt), dtype=jnp.float32)
    y3 = jax.block_until_ready(
        channel_attention_3d(xt, w1, b1, w2, b2, force_two_pass=True, max_s_tile=128))
    y3_ref = _reference_channel_attention_3d(xt, w1, b1, w2, b2)
    assert jnp.allclose(y3, y3_ref, atol=1e-5, rtol=1e-5), "tail-tile path mismatch"

    print("KERNEL_OK")
</pallas_src>

<mosaic_0001>
module attributes {stable_mosaic.version = 11 : i64} {
  func.func @_fused_kernel(%arg0: i32, %arg1: memref<1x32x128xf32, #tpu.memory_space<vmem>>, %arg2: memref<4x32xf32, #tpu.memory_space<vmem>>, %arg3: memref<4x1xf32, #tpu.memory_space<vmem>>, %arg4: memref<32x4xf32, #tpu.memory_space<vmem>>, %arg5: memref<32x1xf32, #tpu.memory_space<vmem>>, %arg6: memref<1x32x128xf32, #tpu.memory_space<vmem>>) attributes {dimension_semantics = [#tpu.dimension_semantics<parallel>], iteration_bounds = array<i64: 2>, scalar_prefetch = 0 : i64, scratch_operands = 0 : i64, tpu.core_type = #tpu.core_type<tc>, window_params = [{transform_indices = @transform_0, window_bounds = array<i64: 1, 32, 128>}, {pipeline_mode = #tpu.pipeline_mode<synchronous>, transform_indices = @transform_1, window_bounds = array<i64: 4, 32>}, {pipeline_mode = #tpu.pipeline_mode<synchronous>, transform_indices = @transform_2, window_bounds = array<i64: 4, 1>}, {pipeline_mode = #tpu.pipeline_mode<synchronous>, transform_indices = @transform_3, window_bounds = array<i64: 32, 4>}, {pipeline_mode = #tpu.pipeline_mode<synchronous>, transform_indices = @transform_4, window_bounds = array<i64: 32, 1>}, {transform_indices = @transform_5, window_bounds = array<i64: 1, 32, 128>}]} {
    %c0 = arith.constant 0 : index
    %c0_0 = arith.constant 0 : index
    %c0_1 = arith.constant 0 : index
    %0 = vector.load %arg1[%c0, %c0_0, %c0_1] : memref<1x32x128xf32, #tpu.memory_space<vmem>>, vector<1x32x128xf32>
    %1 = vector.shape_cast %0 : vector<1x32x128xf32> to vector<32x128xf32>
    %cst = arith.constant dense<0.000000e+00> : vector<32xf32>
    %2 = vector.multi_reduction <add>, %1, %cst [1] : vector<32x128xf32> to vector<32xf32>
    %3 = vector.shape_cast %2 : vector<32xf32> to vector<32x1xf32>
    %cst_2 = arith.constant 7.812500e-03 : f32
    %4 = vector.broadcast %cst_2 : f32 to vector<32x1xf32>
    %5 = arith.mulf %3, %4 : vector<32x1xf32>
    %c0_3 = arith.constant 0 : index
    %c0_4 = arith.constant 0 : index
    %6 = vector.load %arg2[%c0_3, %c0_4] : memref<4x32xf32, #tpu.memory_space<vmem>>, vector<4x32xf32>
    %c0_5 = arith.constant 0 : index
    %c0_6 = arith.constant 0 : index
    %7 = vector.load %arg3[%c0_5, %c0_6] : memref<4x1xf32, #tpu.memory_space<vmem>>, vector<4x1xf32>
    %c0_7 = arith.constant 0 : index
    %c0_8 = arith.constant 0 : index
    %8 = vector.load %arg4[%c0_7, %c0_8] : memref<32x4xf32, #tpu.memory_space<vmem>>, vector<32x4xf32>
    %c0_9 = arith.constant 0 : index
    %c0_10 = arith.constant 0 : index
    %9 = vector.load %arg5[%c0_9, %c0_10] : memref<32x1xf32, #tpu.memory_space<vmem>>, vector<32x1xf32>
    %cst_11 = arith.constant dense<0.000000e+00> : vector<4x1xf32>
    %10 = tpu.matmul %6, %5, %cst_11 {dimension_numbers = #tpu.dot_dimension_numbers<[1], [0], [0], [1], [0, 0, 1, 1], [], []>} : vector<4x32xf32>, vector<32x1xf32>, vector<4x1xf32> -> vector<4x1xf32>
    %11 = arith.addf %10, %7 : vector<4x1xf32>
    %cst_12 = arith.constant 5.000000e-01 : f32
    %12 = vector.broadcast %cst_12 : f32 to vector<4x1xf32>
    %13 = arith.mulf %12, %11 : vector<4x1xf32>
    %cst_13 = arith.constant 4.471500e-02 : f32
    %14 = vector.broadcast %cst_13 : f32 to vector<4x1xf32>
    %15 = arith.mulf %14, %11 : vector<4x1xf32>
    %16 = arith.mulf %15, %11 : vector<4x1xf32>
    %17 = arith.mulf %16, %11 : vector<4x1xf32>
    %18 = arith.addf %11, %17 : vector<4x1xf32>
    %cst_14 = arith.constant 0.797884583 : f32
    %19 = vector.broadcast %cst_14 : f32 to vector<4x1xf32>
    %20 = arith.mulf %19, %18 : vector<4x1xf32>
    %21 = math.tanh %20 : vector<4x1xf32>
    %cst_15 = arith.constant 1.000000e+00 : f32
    %22 = vector.broadcast %cst_15 : f32 to vector<4x1xf32>
    %23 = arith.addf %22, %21 : vector<4x1xf32>
    %24 = arith.mulf %13, %23 : vector<4x1xf32>
    %cst_16 = arith.constant dense<0.000000e+00> : vector<32x1xf32>
    %25 = tpu.matmul %8, %24, %cst_16 {dimension_numbers = #tpu.dot_dimension_numbers<[1], [0], [0], [1], [0, 0, 1, 1], [], []>} : vector<32x4xf32>, vector<4x1xf32>, vector<32x1xf32> -> vector<32x1xf32>
    %26 = arith.addf %25, %9 : vector<32x1xf32>
    %cst_17 = arith.constant 0.000000e+00 : f32
    %27 = vector.broadcast %cst_17 : f32 to vector<32x1xf32>
    %28 = arith.subf %27, %26 : vector<32x1xf32>
    %29 = math.exp %28 : vector<32x1xf32>
    %cst_18 = arith.constant 1.000000e+00 : f32
    %30 = vector.broadcast %cst_18 : f32 to vector<32x1xf32>
    %31 = arith.addf %30, %29 : vector<32x1xf32>
    %cst_19 = arith.constant 1.000000e+00 : f32
    %32 = vector.broadcast %cst_19 : f32 to vector<32x1xf32>
    %33 = arith.divf %32, %31 : vector<32x1xf32>
    %34 = vector.broadcast %33 : vector<32x1xf32> to vector<32x128xf32>
    %35 = arith.mulf %1, %34 : vector<32x128xf32>
    %c0_20 = arith.constant 0 : index
    %c0_21 = arith.constant 0 : index
    %c0_22 = arith.constant 0 : index
    %36 = vector.load %arg6[%c0_20, %c0_21, %c0_22] : memref<1x32x128xf32, #tpu.memory_space<vmem>>, vector<1x32x128xf32>
    %37 = vector.shape_cast %36 : vector<1x32x128xf32> to vector<32x128xf32>
    %38 = vector.shape_cast %35 : vector<32x128xf32> to vector<1x32x128xf32>
    tpu.vector_store %arg6[%c0_20, %c0_21, %c0_22], %38 {strides = array<i32>} : memref<1x32x128xf32, #tpu.memory_space<vmem>>, vector<1x32x128xf32>,
    return
  }
  func.func @transform_0(%arg0: i32) -> (i32, i32, i32) {
    %c0_i32 = arith.constant 0 : i32
    %c0_i32_0 = arith.constant 0 : i32
    %c0_i32_1 = arith.constant 0 : i32
    return %arg0, %c0_i32, %c0_i32_0 : i32, i32, i32
  }
  func.func @transform_1(%arg0: i32) -> (i32, i32) {
    %c0_i32 = arith.constant 0 : i32
    %c0_i32_0 = arith.constant 0 : i32
    %c0_i32_1 = arith.constant 0 : i32
    return %c0_i32, %c0_i32_0 : i32, i32
  }
  func.func @transform_2(%arg0: i32) -> (i32, i32) {
    %c0_i32 = arith.constant 0 : i32
    %c0_i32_0 = arith.constant 0 : i32
    %c0_i32_1 = arith.constant 0 : i32
    return %c0_i32, %c0_i32_0 : i32, i32
  }
  func.func @transform_3(%arg0: i32) -> (i32, i32) {
    %c0_i32 = arith.constant 0 : i32
    %c0_i32_0 = arith.constant 0 : i32
    %c0_i32_1 = arith.constant 0 : i32
    return %c0_i32, %c0_i32_0 : i32, i32
  }
  func.func @transform_4(%arg0: i32) -> (i32, i32) {
    %c0_i32 = arith.constant 0 : i32
    %c0_i32_0 = arith.constant 0 : i32
    %c0_i32_1 = arith.constant 0 : i32
    return %c0_i32, %c0_i32_0 : i32, i32
  }
  func.func @transform_5(%arg0: i32) -> (i32, i32, i32) {
    %c0_i32 = arith.constant 0 : i32
    %c0_i32_0 = arith.constant 0 : i32
    %c0_i32_1 = arith.constant 0 : i32
    return %arg0, %c0_i32, %c0_i32_0 : i32, i32, i32
  }
}

</mosaic_0001>

<bundles_post_ra>
// kernel: tpu_custom_call.1
= control target key start
LH: loop header
LB: loop body
LE: loop exit
PB: predicated region body
PF: predicated region fallthrough
CT: control target
= control target key end

     0   :  { %10 = vsyncpa [#allocation3], 0  ;;  %s823_s0 = inlined_call_operand.vmem [shape: f32[2,32,128], index: 0, kind: input, shape index: {}]   ;;  %s824_s1 = inlined_call_operand.vmem [shape: f32[4,32], index: 1, kind: input, shape index: {}]   ;;  %s825_s2 = inlined_call_operand.vmem [shape: f32[4,1], index: 2, kind: input, shape index: {}]   ;;  %s826_s3 = inlined_call_operand.vmem [shape: f32[32,4], index: 3, kind: input, shape index: {}]   ;;  %s827_s4 = inlined_call_operand.vmem [shape: f32[32,1], index: 4, kind: input, shape index: {}]   ;;  %s828_s5 = inlined_call_operand.hbm [shape: f32[2,32,128], index: 5, kind: output, shape index: {}]  }
   0x1   :  { %12 = vsyncpa [#allocation3 + $0x1], 0  ;;  %s692_s18 = smov 0   ;;  %s694_s19 = smov 0  }
   0x2   :  { %s696_s20 = smov 0   ;;  %s698_s21 = smov 0  }
   0x3 LB: > { %s713_s22 = sadd.s32 4294967295, %s657_s21   ;;  %s510_s23 = sadd.s32 4294967294, %s657_s21   ;;  %s657_s21 = sphi %s698_s21, %s834_s21   ;;  %s653_s20 = sphi %s696_s20, %s833_s20   ;;  %s649_s19 = sphi %s694_s19, %s832_s19   ;;  %s645_s18 = sphi %s692_s18, %s831_s18  }
   0x4   : > { %s717_s24 = sadd.s32 1, %s657_s21   ;;  %s135_s25 = sadd.s32 1, %s653_s20 }
   0x5   : > { %s132_s26 = ssub.s32 %s657_s21, %s717_s24  ;;  %p145_p0 = scmp.ne.s32.totalorder %s653_s20, %s649_s19 }
   0x6   : > { %p133_p1 = scmp.eq.s32.totalorder %s132_s26, 0  ;;  %p146_p2 = scmp.eq.s32.totalorder %s713_s22, 1 }
   0x7   : > { %p151_p3 = scmp.ne.s32.totalorder %s649_s19, %s645_s18  ;;  %p152_p4 = scmp.eq.s32.totalorder %s510_s23, 1 }
   0x8   : > { %s728_s27 = scalar_select %p133_p1, %s653_s20, %s135_s25  }
   0x9   : > { %p730_p5 = por %p146_p2, %p145_p0  ;;  %p734_p6 = por %p152_p4, %p151_p3 }
   0xa   : > { %p513_p7 = scmp.ge.s32.totalorder %s657_s21, 1  ;;  %p190_p8 = scmp.lt.s32.totalorder %s657_s21, 3 }
   0xc   : > { %p191_p9 = pnand %p513_p7, %p190_p8 }
   0xd   : > { %p218_p10 = scmp.lt.s32.totalorder (!%p191_p9), %s713_s22, 1  ;;  %s215_s14 = sand.u32 (!%p191_p9), 1, %s649_s19  }
   0xe   : > { %194 = sbr.rel (%p191_p9) target bundleno = 599 (0x257), region = 40  ;;  %s514_s15 = sshll.u32 (!%p191_p9), %s215_s14, 5 }
   0xf   : > { %s217_s16 = scalar_lea.vmem (!%p191_p9), [#allocation2], %s514_s15  ;;  %s529_s17 = sshll.u32 (!%p191_p9), %s713_s22, 5 }
  0x10   : > { %s444_s26 = scalar_lea.hbm (!%p191_p9), %s828_s5, %s529_s17  ;;  %s433_s7 = scalar_lea.sflag (!%p191_p9), [#allocation3], %s215_s14 }
  0x11   : > { %s615_s11 = scalar_lea.hbm (!%p191_p9), %s828_s5, 64 }
  0x13   : > { %s219_s30 = scalar_select %p218_p10, %s713_s22, 1  ;;  %v239_v12 = vld [vmem:[%s824_s1] sm:$0xf]  ;;  %vm249_vm0 = vcmask 261120   ;;  %vm295_vm1 = vcmask 1043456   ;;  %vm282_vm2 = vcmask 31744  }
  0x14   : > { %v240_v13 = vld [vmem:[%s825_s2] sm:$0xf]  ;;  %v242_v26 = vld [vmem:[%s826_s3 + $0x8] sm:$0xff]  ;;  %v244_v27 = vld [vmem:[%s826_s3 + $0x18] sm:$0xff]  ;;  %v659_v31 = vmov 0  }
  0x15   : > { %s528_s6 = sshll.u32 %s219_s30, 5  ;;  %v241_v25 = vld [vmem:[%s826_s3] sm:$0xff]  ;;  %v243_v28 = vld [vmem:[%s826_s3 + $0x10] sm:$0xff]  ;;  %574 = vset.pattern.permute.xlu2 %v659_v31  ;;  %576 = vset.pattern.permute.xlu1 %v659_v31  ;;  %v246_v35 = vld [vmem:[%s827_s4 + $0x8] sm:$0xff]  ;;  %s445_s30 = sshll.u32 %s217_s16, 4  ;;  %s446_s30 = int_to_ptr.vmem [resolvable:$true] %s445_s30 }
  0x16   : > { %s222_s9 = scalar_lea.vmem %s823_s0, %s528_s6  ;;  %v245_v29 = vld [vmem:[%s827_s4] sm:$0xff]  ;;  %575 = vset.pattern.permute.xlu0 %v659_v31  ;;  %v248_v36 = vld [vmem:[%s827_s4 + $0x18] sm:$0xff]  ;;  %v247_v46 = vld [vmem:[%s827_s4 + $0x10] sm:$0xff]  ;;  %s447_s6 = sshll.u32 %s444_s26, 4  ;;  %s448_s6 = int_to_ptr.hbm [resolvable:$true] %s447_s6 }
  0x17   : > { %v745_v0 = vld [vmem:[%s222_s9 + $0x18] sm:$0xff]  ;;  %v747_v1 = vld [vmem:[%s222_s9 + $0x8] sm:$0xff]  ;;  %v751_v2 = vld [vmem:[%s222_s9 + $0x10] sm:$0xff]  ;;  %s609_s8 = sshra.s32 %s448_s6, 4  ;;  %s610_s8 = int_to_ptr.hbm [resolvable:$true] %s609_s8 }
  0x18   : > { %233 = vadd.xlane.f32.xlu0 %v745_v0  ;;  %229 = vadd.xlane.f32.xlu1 %v747_v1  ;;  %v753_v3 = vld [vmem:[%s222_s9] sm:$0xff]  ;;  %s611_s22 = scalar_lea.hbm %s610_s8, 32  ;;  %p616_p0 = scmp.lt.s32.totalorder %s610_s8, %s828_s5 }
  0x19   : > { %p612_p11 = scmp.ne.s32.totalorder %s610_s8, %s611_s22  ;;  %p617_p1 = scmp.lt.s32.totalorder %s615_s11, %s611_s22 }
  0x1b   : > { %p613_p12 = pnand %p612_p11, %p730_p5  ;;  %p618_p2 = por %p617_p1, %p616_p0 }
  0x1d   : > { %p614_p13 = pneg %p613_p12 }
  0x1f   : > { %p619_p3 = pnand %p618_p2, %p614_p13 }
  0x20   : > { %231 = vadd.xlane.f32.xlu0 %v751_v2  ;;  %227 = vadd.xlane.f32.xlu1 %v753_v3 }
  0x8b   : > { %v234_v4 = vpop.xlane.xlu0 %233  ;;  %v230_v5 = vpop.xlane.xlu1 %229 }
  0x8c   : > { %v238_v6 = vmul.f32 0.0078125, %v234_v4  ;;  %v236_v10 = vmul.f32 0.0078125, %v230_v5 }
  0x8e   : > { %265 = vmatpush.msra.mxu0 %v238_v6 }
  0x93   : > { %v232_v7 = vpop.xlane.xlu0 %231  ;;  %v228_v8 = vpop.xlane.xlu1 %227 }
  0x94   : > { %v237_v9 = vmul.f32 0.0078125, %v232_v7  ;;  %v235_v11 = vmul.f32 0.0078125, %v228_v8 }
  0x96   : > { %266 = vmatpush.msra.mxu0 %v237_v9 }
  0x98   : > { %267 = vmatpush.msra.mxu0 %v236_v10 }
  0x9a   : > { %268 = vmatpush.msra.mxu0 %v235_v11 }
  0x9b   : > { %517 = vmatmul.msk.f32.vlgmr.msra.gmra.mxu0 %vm249_vm0, %v239_v12 }
 0x118   : > { %v270_v14 = vpop.f32.mrf.mxu0 }
 0x119   : > { %v271_v15 = vadd.f32 %v270_v14, %v240_v13 }
 0x11b   : > { %v274_v16 = vmul.f32 0.044715, %v271_v15  ;;  %v273_v22 = vmul.f32 0.5, %v271_v15 }
 0x11d   : > { %v275_v17 = vmul.f32 %v274_v16, %v271_v15 }
 0x11f   : > { %v276_v18 = vmul.f32 %v275_v17, %v271_v15 }
 0x121   : > { %v277_v19 = vadd.f32 %v276_v18, %v271_v15 }
 0x123   : > { %v278_v20 = vmul.f32 0.7978846, %v277_v19 }
 0x125   : > { %577 = vtanh.f32 %v278_v20 }
 0x12b   : > { %v578_v21 = vpop.eup %577 }
 0x12c   : > { %v280_v23 = vadd.f32 1.0, %v578_v21 }
 0x12e   : > { %v281_v24 = vmul.f32 %v280_v23, %v273_v22 }
 0x130   : > { %518 = vmatpush.msk.msra.mxu1 %vm295_vm1, %v281_v24  ;;  %530 = vmatpush.msk.msra.mxu2 %vm295_vm1, %v281_v24 }
 0x131   : > { %531 = vmatpush.msk.msra.mxu3 %vm295_vm1, %v281_v24  ;;  %519 = vmatmul.msk.f32.vlgmr.msra.gmra.mxu1 %vm282_vm2, %v241_v25 }
 0x132   : > { %520 = vmatmul.msk.f32.vlgmr.msra.gmra.mxu2 %vm282_vm2, %v242_v26  ;;  %522 = vmatmul.msk.f32.vlgmr.msra.gmra.mxu3 %vm282_vm2, %v244_v27 }
 0x13a   : > { %521 = vmatmul.msk.f32.gmra.mxu2 %vm282_vm2, %v243_v28 }
 0x1ae   : > { %v316_v30 = vpop.f32.mrf.mxu1 }
 0x1af   : > { %v317_v32 = vadd.f32 %v316_v30, %v245_v29 }
 0x1b1   : > { %v328_v33 = vsub.f32 0.0, %v317_v32 }
 0x1b3   : > { %v332_v34 = vmul.f32 1.442695, %v328_v33 }
 0x1b5   : > { %579 = vpow2.f32 %v332_v34  ;;  %v319_v37 = vpop.f32.mrf.mxu2  ;;  %v325_v38 = vpop.f32.mrf.mxu3 }
 0x1b6   : > { %v320_v39 = vadd.f32 %v319_v37, %v246_v35  ;;  %v326_v40 = vadd.f32 %v325_v38, %v248_v36 }
 0x1b8   : > { %v329_v41 = vsub.f32 0.0, %v320_v39  ;;  %v331_v42 = vsub.f32 0.0, %v326_v40 }
 0x1ba   : > { %v334_v43 = vmul.f32 1.442695, %v329_v41  ;;  %v338_v44 = vmul.f32 1.442695, %v331_v42 }
 0x1bb   : > { %v580_v45 = vpop.eup %579 }
 0x1bc   : > { %v340_v47 = vadd.f32 1.0, %v580_v45  ;;  %581 = vpow2.f32 %v334_v43 }
 0x1bd   : > { %583 = vpow2.f32 %v338_v44  ;;  %v322_v48 = vpop.f32.mrf.mxu2 }
 0x1be   : > { %585 = vrcp.f32 %v340_v47  ;;  %v323_v49 = vadd.f32 %v322_v48, %v247_v46  ;;  %v355_v58 = vand.u32 2147483648, %v340_v47  ;;  %vm349_vm3 = vweird.f32 %v340_v47 }
 0x1bf   : > { %v353_v60 = vand.u32 2147483647, %v340_v47 }
 0x1c0   : > { %v330_v50 = vsub.f32 0.0, %v323_v49  ;;  %v356_v63 = vor.u32 1.1754944e-38, %v355_v58 }
 0x1c1   : > { %vm354_vm6 = vcmp.eq.f32.partialorder %v353_v60, 8.507059e+37 }
 0x1c2   : > { %v582_v51 = vpop.eup %581  ;;  %v336_v52 = vmul.f32 1.442695, %v330_v50 }
 0x1c3   : > { %v584_v53 = vpop.eup %583  ;;  %v341_v54 = vadd.f32 1.0, %v582_v51 }
 0x1c4   : > { %v586_v55 = vpop.eup %585  ;;  %v343_v56 = vadd.f32 1.0, %v584_v53  ;;  %587 = vpow2.f32 %v336_v52 }
 0x1c5   : > { %589 = vrcp.f32 %v341_v54  ;;  %v345_v57 = vmul.f32 %v586_v55, %v340_v47  ;;  %vm350_vm4 = vweird.f32 %v586_v55  ;;  %v370_v16 = vand.u32 2147483648, %v341_v54 }
 0x1c6   : > { %591 = vrcp.f32 %v343_v56  ;;  %vm351_vm5 = vmor %vm349_vm3, %vm350_vm4  ;;  %vm394_vm7 = vweird.f32 %v343_v56  ;;  %v400_v14 = vand.u32 2147483648, %v343_v56  ;;  %v398_v18 = vand.u32 2147483647, %v343_v56 }
 0x1c7   : > { %v346_v59 = vsub.f32 1.0, %v345_v57  ;;  %v368_v19 = vand.u32 2147483647, %v341_v54  ;;  %vm364_vm10 = vweird.f32 %v341_v54  ;;  %v371_v25 = vor.u32 1.1754944e-38, %v370_v16 }
 0x1c8   : > { %v401_v23 = vor.u32 1.1754944e-38, %v400_v14  ;;  %vm399_vm13 = vcmp.eq.f32.partialorder %v398_v18, 8.507059e+37 }
 0x1c9   : > { %v347_v61 = vmul.f32 %v586_v55, %v346_v59  ;;  %vm369_vm14 = vcmp.eq.f32.partialorder %v368_v19, 8.507059e+37 }
 0x1ca   : > { %v588_v62 = vpop.eup %587 }
 0x1cb   : > { %v590_v4 = vpop.eup %589  ;;  %v342_v5 = vadd.f32 1.0, %v588_v62  ;;  %v348_v6 = vadd.f32 %v586_v55, %v347_v61 }
 0x1cc   : > { %v592_v7 = vpop.eup %591  ;;  %v360_v8 = vmul.f32 %v590_v4, %v341_v54  ;;  %vm365_vm8 = vweird.f32 %v590_v4 }
 0x1cd   : > { %593 = vrcp.f32 %v342_v5  ;;  %v352_v9 = vsel %vm351_vm5, %v586_v55, %v348_v6  ;;  %v390_v10 = vmul.f32 %v592_v7, %v343_v56  ;;  %vm395_vm9 = vweird.f32 %v592_v7  ;;  %vm366_vm11 = vmor %vm364_vm10, %vm365_vm8 }
 0x1ce   : > { %v357_v11 = vsel %vm354_vm6, %v356_v63, %v352_v9  ;;  %v361_v12 = vsub.f32 1.0, %v360_v8  ;;  %vm396_vm12 = vmor %vm394_vm7, %vm395_vm9  ;;  %v385_v31 = vand.u32 2147483648, %v342_v5  ;;  %v383_v33 = vand.u32 2147483647, %v342_v5 }
 0x1cf   : > { %406 = vperm.xlu2 %574, %v357_v11   ;;  %v391_v13 = vsub.f32 1.0, %v390_v10  ;;  %vm379_vm0 = vweird.f32 %v342_v5 }
 0x1d0   : > { %v362_v15 = vmul.f32 %v590_v4, %v361_v12  ;;  %v386_v35 = vor.u32 1.1754944e-38, %v385_v31  ;;  %vm384_vm2 = vcmp.eq.f32.partialorder %v383_v33, 8.507059e+37 }
 0x1d1   : > { %v392_v17 = vmul.f32 %v592_v7, %v391_v13 }
 0x1d2   : > { %v363_v20 = vadd.f32 %v590_v4, %v362_v15 }
 0x1d3   : > { %v594_v21 = vpop.eup %593  ;;  %v393_v22 = vadd.f32 %v592_v7, %v392_v17 }
 0x1d4   : > { %v367_v24 = vsel %vm366_vm11, %v590_v4, %v363_v20  ;;  %v375_v26 = vmul.f32 %v594_v21, %v342_v5  ;;  %vm380_vm15 = vweird.f32 %v594_v21 }
 0x1d5   : > { %v397_v27 = vsel %vm396_vm12, %v592_v7, %v393_v22  ;;  %v372_v29 = vsel %vm369_vm14, %v371_v25, %v367_v24  ;;  %vm381_vm1 = vmor %vm379_vm0, %vm380_vm15 }
 0x1d6   : > { %v402_v28 = vsel %vm399_vm13, %v401_v23, %v397_v27  ;;  %v376_v30 = vsub.f32 1.0, %v375_v26 }
 0x1d7   : > { %421 = vperm.xlu1 %576, %v402_v28   ;;  %411 = vperm.xlu2 %574, %v372_v29  }
 0x1d8   : > { %v377_v32 = vmul.f32 %v594_v21, %v376_v30 }
 0x1da   : > { %v378_v34 = vadd.f32 %v594_v21, %v377_v32 }
 0x1dc   : > { %v382_v36 = vsel %vm381_vm1, %v594_v21, %v378_v34 }
 0x1dd   : > { %v387_v37 = vsel %vm384_vm2, %v386_v35, %v382_v36 }
 0x1de   : > { %416 = vperm.xlu0 %575, %v387_v37  }
 0x229   : > { %v407_v38 = vpop.permute.xlu2 %406 }
 0x22a   : > { %v424_v39 = vmul.f32 %v407_v38, %v753_v3 }
 0x22c   : > { %428 = vst [vmem:[%s217_s16] sm:$0xff] %v424_v39 }
 0x231   : > { %v412_v40 = vpop.permute.xlu2 %411 }
 0x232   : > { %v425_v41 = vmul.f32 %v412_v40, %v747_v1 }
 0x234   : > { %429 = vst [vmem:[%s217_s16 + $0x8] sm:$0xff] %v425_v41 }
 0x249   : > { %v422_v42 = vpop.permute.xlu1 %421 }
 0x24a   : > { %v427_v43 = vmul.f32 %v422_v42, %v745_v0 }
 0x24c   : > { %431 = vst [vmem:[%s217_s16 + $0x18] sm:$0xff] %v427_v43 }
 0x250   : > { %v417_v3 = vpop.permute.xlu0 %416 }
 0x251   : > { %v426_v44 = vmul.f32 %v417_v3, %v751_v2 }
 0x253   : > { %430 = vst [vmem:[%s217_s16 + $0x10] sm:$0xff] %v426_v44 }
 0x254   : > { %622 = shalt.err (!%p619_p3)
}
 0x255   : > { %s660_s14 = smov 128   ;;  %s661_s15 = smov 8  }
 0x256   : > { %532 = dma.vmem_to_hbm [thread:$0]  (%p730_p5), %s446_s30, 512, %s448_s6, %s433_s7, %s660_s14, %s660_s14, %s661_s15  }
 0x257 PF: > { %p538_p4 = scmp.ge.s32.totalorder %s657_s21, 2  ;;  %s462_s16 = sand.u32 1, %s645_s18  }
 0x258   : > { %s463_s17 = scalar_lea.sflag [#allocation3], %s462_s16 }
 0x259   : > { %p535_p7 = pnand %p538_p4, %p734_p6 }
 0x25b   : > { %p536_p8 = pneg %p535_p7 }
 0x25d   : > { %640 = dma.done.wait (%p536_p8), %s463_s17, 512  }
 0x25e   : > { %642 = vsyncadd (%p536_p8), %s463_s17, 4294966784  ;;  %p15_p9 = scmp.ge.s32.totalorder %s717_s24, 4   ;;  %s831_s18 = smov %s649_s19 }
 0x25f   : > { %s832_s19 = smov %s653_s20  ;;  %s833_s20 = smov %s728_s27 }
 0x260   : > { %s834_s21 = smov %s717_s24  ;;  %17 = sbr.rel (!%p15_p9) target bundleno = 3 (0x3), region = 75 }
 0x265   :  { %469 = vsyncpa [#allocation3], 1 }
 0x266   :  { %471 = vsyncpa [#allocation3 + $0x1], 1 }

</bundles_post_ra>
